<compile_context>
chip_gen: v7x
topology: tpu7x:2x2x1
jax: 0.10.0
libtpu: 0.0.40
codegen_flags: <defaults>
</compile_context>

<pallas_src>
import functools

import jax
import jax.numpy as jnp
from jax.experimental import pallas as pl
from jax.experimental.pallas import tpu as pltpu


def _round_up(v, m):
    return ((v + m - 1) // m) * m


def _gln_fused_kernel(x_ref, w_ref, b_ref, con_ref, o_ref, *, n_contexts, dp):
    # x:(TB,K)  w:(K,C*Dp)  b:(1,C*Dp)  con:(TB,C)  o:(TB,Dp)
    # Single lane-dense MXU matmul over all contexts at once (f32 accumulation).
    y = jnp.dot(x_ref[...], w_ref[...], preferred_element_type=jnp.float32)
    y = y + b_ref[...].astype(jnp.float32)                       # sublane-broadcast bias add
    con = con_ref[...].astype(jnp.float32)                       # keep VPU math in f32 (v5e)

    acc = jnp.zeros(o_ref.shape, jnp.float32)
    for c in range(n_contexts):                                  # static unroll, C is small
        # slab slices land on 128-lane boundaries (Dp % 128 == 0) -> vreg-aligned
        acc = acc + con[:, c:c + 1] * y[:, c * dp:(c + 1) * dp]
    o_ref[...] = acc.astype(o_ref.dtype)


def prepare_gln_params(W, b, *, outp_dim, n_contexts, param_dtype=None):
    """One-time parameter repack (hoisted out of the per-call hot path).

    W : (outp_dim * n_contexts, inp_dim)  torch nn.Linear weight, row k = d*C + c
    b : (outp_dim * n_contexts,)          torch nn.Linear bias
    Returns Wr_flat (inp_dim, C*Dp), b_flat (1, C*Dp), Dp  where Dp = outp_dim padded
    to a multiple of 128 and context c occupies columns [c*Dp, (c+1)*Dp).
    """
    C = max(n_contexts, 1)
    inp_dim = W.shape[1]
    dp = _round_up(outp_dim, 128)

    Wr = W.reshape(outp_dim, C, inp_dim).transpose(1, 2, 0)          # (C, inp, outp)
    Wr = jnp.pad(Wr, ((0, 0), (0, 0), (0, dp - outp_dim)))           # lane-pad outp -> Dp
    Wr_flat = Wr.transpose(1, 0, 2).reshape(inp_dim, C * dp)         # (inp, C*Dp)

    br = b.reshape(outp_dim, C).T                                    # (C, outp)
    br = jnp.pad(br, ((0, 0), (0, dp - outp_dim)))
    b_flat = br.reshape(1, C * dp).astype(jnp.float32)

    if param_dtype is not None:
        Wr_flat = Wr_flat.astype(param_dtype)                        # e.g. bf16 MXU path
    return Wr_flat, b_flat, dp


@functools.partial(jax.jit, static_argnames=("outp_dim", "n_contexts", "dp"))
def gln_element_forward(x, z, ctx_w, Wr_flat, b_flat, *, outp_dim, n_contexts, dp):
    """Pallas implementation of GLNElement.forward (hot path).

    x      : (B, inp_dim)
    z      : (B, z_dim)           side information for the context gate
    ctx_w  : (z_dim, n_contexts)  deterministic halfspace context projection
    Wr_flat, b_flat, dp           from prepare_gln_params (done once)
    """
    B, inp_dim = x.shape
    C = max(n_contexts, 1)
    out_dtype = x.dtype

    # context(z): one-hot gate over contexts (stop_gradient == torch.no_grad)
    if n_contexts > 1:
        logits = jax.lax.stop_gradient(z @ ctx_w)                    # (B, C)
        con = jax.nn.one_hot(jnp.argmax(logits, axis=-1), C, dtype=jnp.float32)
    else:
        con = jnp.ones((B, 1), dtype=jnp.float32)

    # batch tiling: pad to a multiple of 8 sublanes; up to 256 rows per grid step
    tb = min(_round_up(B, 8), 256)
    bp = _round_up(B, tb)
    if bp != B:
        x = jnp.pad(x, ((0, bp - B), (0, 0)))
        con = jnp.pad(con, ((0, bp - B), (0, 0)))

    x = x.astype(Wr_flat.dtype)   # follows params onto the bf16 MXU path if requested

    out = pl.pallas_call(
        functools.partial(_gln_fused_kernel, n_contexts=C, dp=dp),
        out_shape=jax.ShapeDtypeStruct((bp, dp), out_dtype),
        grid_spec=pltpu.PrefetchScalarGridSpec(
            num_scalar_prefetch=0,
            grid=(bp // tb,),
            in_specs=[
                pl.BlockSpec((tb, inp_dim), lambda i: (i, 0)),       # x batch tile
                pl.BlockSpec((inp_dim, C * dp), lambda i: (0, 0)),   # fused weight (resident)
                pl.BlockSpec((1, C * dp), lambda i: (0, 0)),         # fused bias   (resident)
                pl.BlockSpec((tb, C), lambda i: (i, 0)),             # one-hot gate tile
            ],
            out_specs=pl.BlockSpec((tb, dp), lambda i: (i, 0)),      # lane-dense output
        ),
        compiler_params=pltpu.CompilerParams(
            dimension_semantics=("parallel",),   # independent batch tiles -> megacore on v7x
            # NOTE: for large inp_dim / C*Dp, set vmem_limit_bytes and/or tile K here
            # (resident weight + double-buffered x tiles must fit the scoped VMEM limit).
        ),
    )(x, Wr_flat, b_flat, con)

    return out[:B, :outp_dim]                                        # strip batch/lane padding


if __name__ == "__main__":
    key = jax.random.PRNGKey(0)
    B, inp_dim, outp_dim, n_contexts, z_dim = 8, 32, 16, 4, 8

    k1, k2, k3, k4, k5 = jax.random.split(key, 5)
    x = jax.random.normal(k1, (B, inp_dim), jnp.float32)
    z = jax.random.normal(k2, (B, z_dim), jnp.float32)

    # deterministic parameter init (torch nn.Linear-style uniform bounds)
    bound = 1.0 / float(inp_dim) ** 0.5
    W = jax.random.uniform(k3, (outp_dim * n_contexts, inp_dim), jnp.float32, -bound, bound)
    b = jax.random.uniform(k4, (outp_dim * n_contexts,), jnp.float32, -bound, bound)
    ctx_w = jax.random.normal(k5, (z_dim, n_contexts), jnp.float32)   # halfspace context proj

    # one-time repack, hoisted out of the hot path (param_dtype=jnp.bfloat16 for bf16 MXU)
    Wr_flat, b_flat, dp = prepare_gln_params(W, b, outp_dim=outp_dim, n_contexts=n_contexts)

    out = gln_element_forward(x, z, ctx_w, Wr_flat, b_flat,
                              outp_dim=outp_dim, n_contexts=n_contexts, dp=dp)
    out = jax.block_until_ready(out)

    # pure-JAX reference (mirrors the PyTorch forward exactly)
    con_ref = jax.nn.one_hot(jnp.argmax(z @ ctx_w, axis=-1), n_contexts, dtype=x.dtype)
    lin = x @ W.T + b
    ref = (lin.reshape(B, outp_dim, n_contexts) * con_ref[:, None, :]).sum(-1)

    assert out.shape == (B, outp_dim)
    assert jnp.allclose(out, ref, atol=1e-5, rtol=1e-5), "mismatch vs reference"
    print("KERNEL_OK")
</pallas_src>

<mosaic_0001>
module attributes {stable_mosaic.version = 11 : i64} {
  func.func @_gln_fused_kernel(%arg0: i32, %arg1: memref<8x32xf32, #tpu.memory_space<vmem>>, %arg2: memref<32x512xf32, #tpu.memory_space<vmem>>, %arg3: memref<1x512xf32, #tpu.memory_space<vmem>>, %arg4: memref<8x4xf32, #tpu.memory_space<vmem>>, %arg5: memref<8x128xf32, #tpu.memory_space<vmem>>) attributes {dimension_semantics = [#tpu.dimension_semantics<parallel>], iteration_bounds = array<i64: 1>, scalar_prefetch = 0 : i64, scratch_operands = 0 : i64, tpu.core_type = #tpu.core_type<tc>, window_params = [{transform_indices = @transform_0, window_bounds = array<i64: 8, 32>}, {pipeline_mode = #tpu.pipeline_mode<synchronous>, transform_indices = @transform_1, window_bounds = array<i64: 32, 512>}, {pipeline_mode = #tpu.pipeline_mode<synchronous>, transform_indices = @transform_2, window_bounds = array<i64: 1, 512>}, {transform_indices = @transform_3, window_bounds = array<i64: 8, 4>}, {transform_indices = @transform_4, window_bounds = array<i64: 8, 128>}]} {
    %c0 = arith.constant 0 : index
    %c0_0 = arith.constant 0 : index
    %0 = vector.load %arg1[%c0, %c0_0] : memref<8x32xf32, #tpu.memory_space<vmem>>, vector<8x32xf32>
    %c0_1 = arith.constant 0 : index
    %c0_2 = arith.constant 0 : index
    %1 = vector.load %arg2[%c0_1, %c0_2] : memref<32x512xf32, #tpu.memory_space<vmem>>, vector<32x512xf32>
    %cst = arith.constant dense<0.000000e+00> : vector<8x512xf32>
    %2 = tpu.matmul %0, %1, %cst {dimension_numbers = #tpu.dot_dimension_numbers<[1], [0], [0], [1], [0, 0, 1, 1], [], []>} : vector<8x32xf32>, vector<32x512xf32>, vector<8x512xf32> -> vector<8x512xf32>
    %c0_3 = arith.constant 0 : index
    %c0_4 = arith.constant 0 : index
    %3 = vector.load %arg3[%c0_3, %c0_4] : memref<1x512xf32, #tpu.memory_space<vmem>>, vector<1x512xf32>
    %4 = vector.broadcast %3 : vector<1x512xf32> to vector<8x512xf32>
    %5 = arith.addf %2, %4 : vector<8x512xf32>
    %c0_5 = arith.constant 0 : index
    %c0_6 = arith.constant 0 : index
    %6 = vector.load %arg4[%c0_5, %c0_6] : memref<8x4xf32, #tpu.memory_space<vmem>>, vector<8x4xf32>
    %cst_7 = arith.constant 0.000000e+00 : f32
    %7 = vector.broadcast %cst_7 : f32 to vector<8x128xf32>
    %8 = vector.extract_strided_slice %6 {offsets = [0, 0], sizes = [8, 1], strides = [1, 1]} : vector<8x4xf32> to vector<8x1xf32>
    %9 = vector.extract_strided_slice %5 {offsets = [0, 0], sizes = [8, 128], strides = [1, 1]} : vector<8x512xf32> to vector<8x128xf32>
    %10 = vector.broadcast %8 : vector<8x1xf32> to vector<8x128xf32>
    %11 = arith.mulf %10, %9 : vector<8x128xf32>
    %12 = arith.addf %7, %11 : vector<8x128xf32>
    %13 = vector.extract_strided_slice %6 {offsets = [0, 1], sizes = [8, 1], strides = [1, 1]} : vector<8x4xf32> to vector<8x1xf32>
    %14 = vector.extract_strided_slice %5 {offsets = [0, 128], sizes = [8, 128], strides = [1, 1]} : vector<8x512xf32> to vector<8x128xf32>
    %15 = vector.broadcast %13 : vector<8x1xf32> to vector<8x128xf32>
    %16 = arith.mulf %15, %14 : vector<8x128xf32>
    %17 = arith.addf %12, %16 : vector<8x128xf32>
    %18 = vector.extract_strided_slice %6 {offsets = [0, 2], sizes = [8, 1], strides = [1, 1]} : vector<8x4xf32> to vector<8x1xf32>
    %19 = vector.extract_strided_slice %5 {offsets = [0, 256], sizes = [8, 128], strides = [1, 1]} : vector<8x512xf32> to vector<8x128xf32>
    %20 = vector.broadcast %18 : vector<8x1xf32> to vector<8x128xf32>
    %21 = arith.mulf %20, %19 : vector<8x128xf32>
    %22 = arith.addf %17, %21 : vector<8x128xf32>
    %23 = vector.extract_strided_slice %6 {offsets = [0, 3], sizes = [8, 1], strides = [1, 1]} : vector<8x4xf32> to vector<8x1xf32>
    %24 = vector.extract_strided_slice %5 {offsets = [0, 384], sizes = [8, 128], strides = [1, 1]} : vector<8x512xf32> to vector<8x128xf32>
    %25 = vector.broadcast %23 : vector<8x1xf32> to vector<8x128xf32>
    %26 = arith.mulf %25, %24 : vector<8x128xf32>
    %27 = arith.addf %22, %26 : vector<8x128xf32>
    %c0_8 = arith.constant 0 : index
    %c0_9 = arith.constant 0 : index
    %28 = vector.load %arg5[%c0_8, %c0_9] : memref<8x128xf32, #tpu.memory_space<vmem>>, vector<8x128xf32>
    tpu.vector_store %arg5[%c0_8, %c0_9], %27 {strides = array<i32>} : memref<8x128xf32, #tpu.memory_space<vmem>>, vector<8x128xf32>,
    return
  }
  func.func @transform_0(%arg0: i32) -> (i32, i32) {
    %c0_i32 = arith.constant 0 : i32
    %c0_i32_0 = arith.constant 0 : i32
    return %arg0, %c0_i32 : i32, i32
  }
  func.func @transform_1(%arg0: i32) -> (i32, i32) {
    %c0_i32 = arith.constant 0 : i32
    %c0_i32_0 = arith.constant 0 : i32
    %c0_i32_1 = arith.constant 0 : i32
    return %c0_i32, %c0_i32_0 : i32, i32
  }
  func.func @transform_2(%arg0: i32) -> (i32, i32) {
    %c0_i32 = arith.constant 0 : i32
    %c0_i32_0 = arith.constant 0 : i32
    %c0_i32_1 = arith.constant 0 : i32
    return %c0_i32, %c0_i32_0 : i32, i32
  }
  func.func @transform_3(%arg0: i32) -> (i32, i32) {
    %c0_i32 = arith.constant 0 : i32
    %c0_i32_0 = arith.constant 0 : i32
    return %arg0, %c0_i32 : i32, i32
  }
  func.func @transform_4(%arg0: i32) -> (i32, i32) {
    %c0_i32 = arith.constant 0 : i32
    %c0_i32_0 = arith.constant 0 : i32
    return %arg0, %c0_i32 : i32, i32
  }
}

</mosaic_0001>

<bundles_post_ra>
// kernel: gln_element_forward.1
= control target key start
LH: loop header
LB: loop body
LE: loop exit
PB: predicated region body
PF: predicated region fallthrough
CT: control target
= control target key end

     0   :  { %9 = vsyncpa [#allocation3], 0  ;;  %s406_s0 = inlined_call_operand.vmem [shape: f32[8,32], index: 0, kind: input, shape index: {}]   ;;  %s407_s1 = inlined_call_operand.hbm [shape: f32[32,512], index: 1, kind: input, shape index: {}]   ;;  %s408_s2 = inlined_call_operand.vmem [shape: f32[1,512], index: 2, kind: input, shape index: {}]   ;;  %s409_s3 = inlined_call_operand.vmem [shape: f32[8,4], index: 3, kind: input, shape index: {}]   ;;  %s410_s4 = inlined_call_operand.hbm [shape: f32[8,128], index: 4, kind: output, shape index: {}]  }
   0x1   :  { %10 = vsyncpa [#allocation4], 0  ;;  %s339_s15 = smov [#allocation2]   ;;  %s291_s19 = scalar_lea.hbm %s407_s1, 2048 }
   0x2   :  { %s18_s16 = sshll.u32 %s339_s15, 4  ;;  %p292_p0 = scmp.ne.s32.totalorder %s407_s1, %s291_s19  ;;  %s19_s16 = int_to_ptr.vmem [resolvable:$true] %s18_s16 }
   0x3   :  { %p295_p1 = scmp.lt.u32.totalorder %s291_s19, %s407_s1 }
   0x5   :  { %p297_p2 = pnand %p295_p1, %p292_p0 }
   0x7   :  { %300 = shalt.err (!%p297_p2)
}
   0x8   :  { %s301_s24 = scalar_lea.vmem %s19_s16, 2048  ;;  %p306_p4 = scmp.lt.s32.totalorder %s19_s16, %s19_s16 }
   0x9   :  { %p302_p3 = scmp.ne.s32.totalorder %s19_s16, %s301_s24  ;;  %p307_p5 = scmp.lt.s32.totalorder %s301_s24, %s301_s24 }
   0xb   :  { %p308_p6 = por %p307_p5, %p306_p4 }
   0xd   :  { %p309_p7 = pnand %p308_p6, %p302_p3 }
   0xf   :  { %312 = shalt.err (!%p309_p7)
}
  0x10   :  { %s340_s25 = smov 512   ;;  %s341_s26 = smov 32  }
  0x11   :  { %24 = dma.hbm_to_vmem [thread:$0]  %s407_s1, 2048, %s19_s16, [#allocation3], %s340_s25, %s340_s25, %s341_s26  }
  0x12   :  { %335 = dma.done.wait [#allocation3], 2048  }
  0x13   :  { %336 = vsyncadd [#allocation3], 4294965248  ;;  %v342_v0 = vmov 0.0   ;;  %v343_v1 = vmov 0   ;;  %v344_v2 = vmov 2   ;;  %v34_v3 = vld [vmem:[#allocation2 + $0x8] sm:$0xff]  ;;  %v51_v31 = vlaneseq }
  0x14   :  { %139 = vmatprep.mubr.f32.mxu0 %v342_v0  ;;  %210 = vmatprep.mubr.f32.mxu1 %v342_v0  ;;  %v38_v4 = vld [vmem:[#allocation2 + $0x28] sm:$0xff]  ;;  %v36_v5 = vld [vmem:[#allocation2 + $0x18] sm:$0xff]  ;;  %v33_v8 = vld [vmem:[#allocation2] sm:$0xff]  ;;  %vm71_vm0 = vcmask 261120   ;;  %v345_v29 = vmov 1   ;;  %v346_v30 = vmov 3  }
  0x15   :  { %286 = vset.pattern.permute.xlu0 %v343_v1  ;;  %288 = vset.pattern.permute.xlu1 %v344_v2  ;;  %v261_v6 = vpack.c.bf16 %v38_v4, %v34_v3  ;;  %v40_v7 = vld [vmem:[#allocation2 + $0x38] sm:$0xff]  ;;  %v37_v9 = vld [vmem:[#allocation2 + $0x20] sm:$0xff]  ;;  %v35_v12 = vld [vmem:[#allocation2 + $0x10] sm:$0xff]  ;;  %v52_v32 = vshrl.u32 %v51_v31, 7 }
  0x16   :  { %v269_v10 = vpack.c.bf16 %v40_v7, %v36_v5  ;;  %v263_v11 = vpack.c.bf16 %v37_v9, %v33_v8  ;;  %v39_v13 = vld [vmem:[#allocation2 + $0x30] sm:$0xff]  ;;  %v42_v14 = vld [vmem:[#allocation2 + $0x48] sm:$0xff]  ;;  %v44_v17 = vld [vmem:[#allocation2 + $0x58] sm:$0xff] }
  0x17   :  { %262 = vmatprep.subr.bf16.mxu0 %v261_v6  ;;  %v271_v15 = vpack.c.bf16 %v39_v13, %v35_v12  ;;  %v46_v16 = vld [vmem:[#allocation2 + $0x68] sm:$0xff]  ;;  %v48_v18 = vld [vmem:[#allocation2 + $0x78] sm:$0xff]  ;;  %v41_v21 = vld [vmem:[#allocation2 + $0x40] sm:$0xff]  ;;  %v53_v33 = vsub.s32 0, %v52_v32  ;;  %v61_v36 = vsub.s32 2, %v52_v32  ;;  %v57_v37 = vsub.s32 1, %v52_v32 }
  0x18   :  { %270 = vmatprep.subr.bf16.mxu1 %v269_v10  ;;  %264 = vmatpush1.bf16.msra.mxu0 %v263_v11  ;;  %v265_v19 = vpack.c.bf16 %v46_v16, %v42_v14  ;;  %v273_v20 = vpack.c.bf16 %v48_v18, %v44_v17  ;;  %v45_v22 = vld [vmem:[#allocation2 + $0x60] sm:$0xff]  ;;  %v43_v23 = vld [vmem:[#allocation2 + $0x50] sm:$0xff]  ;;  %v65_v38 = vsub.s32 3, %v52_v32 }
  0x19   :  { %272 = vmatpush1.bf16.msra.mxu1 %v271_v15  ;;  %v267_v24 = vpack.c.bf16 %v45_v22, %v41_v21  ;;  %v47_v25 = vld [vmem:[#allocation2 + $0x70] sm:$0xff]  ;;  %v217_v26 = vld [vmem:[%s409_s3] sm:$0xff] }
  0x1a   :  { %266 = vmatprep.subr.bf16.mxu0 %v265_v19  ;;  %274 = vmatprep.subr.bf16.mxu1 %v273_v20  ;;  %v275_v27 = vpack.c.bf16 %v47_v25, %v43_v23  ;;  %v32_v28 = vld [vmem:[%s406_s0] sm:$0xff]  ;;  %s347_s0 = smov [#allocation5]  }
  0x1b   :  { %220 = vperm.xlu0 %286, %v217_v26   ;;  %232 = vperm.xlu1 %288, %v217_v26   ;;  %v49_v35 = vld [vmem:[%s408_s2] sm:$0xf]  ;;  %s250_s2 = sshll.u32 %s347_s0, 4  ;;  %s251_s2 = int_to_ptr.vmem [resolvable:$true] %s250_s2 }
  0x1c   :  { %268 = vmatpush1.bf16.msra.mxu0 %v267_v24  ;;  %v54_v39 = vrot.slane %v49_v35, %v53_v33  ;;  %v62_v40 = vrot.slane %v49_v35, %v61_v36  ;;  %v58_v41 = vrot.slane %v49_v35, %v57_v37  ;;  %v66_v45 = vrot.slane %v49_v35, %v65_v38  ;;  %s313_s7 = scalar_lea.vmem %s251_s2, 128  ;;  %p318_p9 = scmp.lt.s32.totalorder %s251_s2, %s251_s2 }
  0x1d   :  { %276 = vmatpush1.bf16.msra.mxu1 %v275_v27  ;;  %p314_p8 = scmp.ne.s32.totalorder %s251_s2, %s313_s7  ;;  %p319_p10 = scmp.lt.s32.totalorder %s313_s7, %s313_s7 }
  0x1f   :  { %259 = vmatmul.mubr.msk.f32.vlgmr.msra.gmra.mrb[0].mxu0 %vm71_vm0, %v32_v28  ;;  %287 = vset.pattern.permute.xlu0 %v345_v29  ;;  %p320_p11 = por %p319_p10, %p318_p9 }
  0x20   :  { %260 = vmatmul.mubr.msk.f32.vlgmr.msra.gmra.mrb[0].mxu1 %vm71_vm0, %v32_v28  ;;  %226 = vperm.xlu0 %287, %v217_v26  }
  0x21   :  { %289 = vset.pattern.permute.xlu1 %v346_v30  ;;  %p321_p12 = pnand %p320_p11, %p314_p8 }
  0x22   :  { %238 = vperm.xlu1 %289, %v217_v26  }
  0x24   :  { %290 = vset.pattern.permute.xlu0 %v346_v30 }
  0x9a   :  { %v221_v34 = vpop.permute.xlu0 %220  ;;  %v233_v42 = vpop.permute.xlu1 %232 }
  0x9f   :  { %v227_v44 = vpop.permute.xlu0 %226 }
  0xa1   :  { %v239_v55 = vpop.permute.xlu1 %238 }
  0xf2   :  { %v141_v43 = vpop.f32.mrb[0].mxu0 }
  0xf3   :  { %v142_v46 = vadd.f32 %v141_v43, %v54_v39  ;;  %v212_v47 = vpop.f32.mrb[0].mxu1  ;;  %v143_v48 = vpop.f32.mrb[1].mxu0 }
  0xf4   :  { %v213_v49 = vadd.f32 %v212_v47, %v62_v40  ;;  %v144_v50 = vadd.f32 %v143_v48, %v58_v41  ;;  %v214_v51 = vpop.f32.mrb[1].mxu1 }
  0xf5   :  { %v223_v52 = vmul.f32 %v221_v34, %v142_v46  ;;  %v215_v54 = vadd.f32 %v214_v51, %v66_v45 }
  0xf6   :  { %v229_v53 = vmul.f32 %v227_v44, %v144_v50  ;;  %v235_v56 = vmul.f32 %v233_v42, %v213_v49 }
  0xf7   :  { %v241_v59 = vmul.f32 %v239_v55, %v215_v54 }
  0xf8   :  { %v230_v57 = vadd.f32 %v229_v53, %v223_v52 }
  0xfa   :  { %v236_v58 = vadd.f32 %v235_v56, %v230_v57 }
  0xfc   :  { %v242_v60 = vadd.f32 %v241_v59, %v236_v58 }
  0xfe   :  { %243 = vst [vmem:[#allocation5] sm:$0xff] %v242_v60 }
  0xff   :  { %324 = shalt.err (!%p321_p12)
}
 0x100   :  { %s325_s10 = scalar_lea.hbm %s410_s4, 128 }
 0x101   :  { %p326_p13 = scmp.ne.s32.totalorder %s410_s4, %s325_s10  ;;  %p329_p0 = scmp.lt.u32.totalorder %s325_s10, %s410_s4 }
 0x103   :  { %p331_p1 = pnand %p329_p0, %p326_p13 }
 0x105   :  { %334 = shalt.err (!%p331_p1)
}
 0x106   :  { %253 = dma.vmem_to_hbm [thread:$0]  %s251_s2, 128, %s410_s4, [#allocation4]  }
 0x107   :  { %337 = dma.done.wait [#allocation4], 128  }
 0x108   :  { %338 = vsyncadd [#allocation4], 4294967168 }
 0x109   :  { %257 = vsyncpa [#allocation3], 1 }
 0x10a   :  { %258 = vsyncpa [#allocation4], 1 }

</bundles_post_ra>
